<compile_context>
chip_gen: v7x
topology: tpu7x:2x2x1
jax: 0.10.0
libtpu: 0.0.40
codegen_flags: <defaults>
</compile_context>

<pallas_src>
import functools
import math

import jax
import jax.numpy as jnp
from jax.experimental import pallas as pl
from jax.experimental.pallas import tpu as pltpu


def _round_up(v, m):
    return ((v + m - 1) // m) * m


def _cdiv(a, b):
    return (a + b - 1) // b


def _l2norm(a):
    # F.normalize(p=2, dim=-1), eps=1e-12 equivalent (rsqrt + mul), f32.
    ssq = jnp.sum(a * a, axis=-1, keepdims=True)
    return a * jax.lax.rsqrt(jnp.maximum(ssq, 1e-24))


def _loss_kernel(ls_ref, x_ref, y_ref, wt_ref, lab_ref,
                 nloss_ref, prec_ref,
                 xn_ref, xnb_ref, iota_ref, m_ref, l_ref, tgt_ref,
                 bval_ref, bidx_ref,
                 *, cos_m, sin_m, th, mm, s, n_classes, c_tile):
    c = pl.program_id(0)
    n_c = pl.num_programs(0)
    B = x_ref.shape[0]
    NEG = jnp.float32(-1e30)   # keep finite: 0 * NEG must stay 0 (not NaN)

    def l2norm(a):
        ssq = jnp.sum(a * a, axis=-1, keepdims=True)
        return a * jax.lax.rsqrt(jnp.maximum(ssq, 1e-24))

    # ---------------- step 0: normalize x once, reset AAM accumulators ------
    @pl.when(c == 0)
    def _init():
        xn = l2norm(x_ref[...])
        xn_ref[...] = xn                                  # f32, for ClipLoss
        xnb_ref[...] = xn.astype(jnp.bfloat16)            # bf16 MXU operand
        iota_ref[...] = jax.lax.broadcasted_iota(jnp.int32, (B, c_tile), 1)
        m_ref[...] = jnp.full(m_ref.shape, NEG, jnp.float32)
        l_ref[...] = jnp.zeros(l_ref.shape, jnp.float32)
        tgt_ref[...] = jnp.zeros(tgt_ref.shape, jnp.float32)
        bval_ref[...] = jnp.full(bval_ref.shape, NEG, jnp.float32)
        bidx_ref[...] = jnp.zeros(bidx_ref.shape, jnp.int32)

    # ---------------- AAMsoftmax: one class tile per grid step --------------
    lab = lab_ref[...]                                    # (B, 1) int32

    # bf16 x bf16 -> f32 accumulate on the MXU.
    cosine = jnp.dot(xnb_ref[...], wt_ref[...],
                     preferred_element_type=jnp.float32)  # (B, c_tile) f32

    global_ids = iota_ref[...] + c * c_tile               # reuse cached iota
    one_hot = (global_ids == lab).astype(jnp.float32)     # scatter_(1,label,1)
    valid = global_ids < n_classes

    # Arc-margin math only on the single target logit of each row.
    cos_t = jnp.sum(one_hot * cosine, axis=-1, keepdims=True)   # (B, 1)
    sin_t = jnp.sqrt(jnp.clip(1.0 - cos_t * cos_t, 0.0, 1.0))
    phi_t = cos_t * cos_m - sin_t * sin_m
    phi_t = jnp.where(cos_t - th > 0, phi_t, cos_t - mm)

    # output = s*(one_hot*phi + (1-one_hot)*cosine) == s*(cosine + oh*(phi-cos_t))
    output = s * (cosine + one_hot * (phi_t - cos_t))
    output = jnp.where(valid, output, NEG)                # mask padded classes

    # Online log-sum-exp update.
    m_old = m_ref[...]
    tile_max = jnp.max(output, axis=-1, keepdims=True)
    m_new = jnp.maximum(m_old, tile_max)
    alpha = jnp.exp(m_old - m_new)
    p_sum = jnp.sum(jnp.exp(output - m_new), axis=-1, keepdims=True)
    l_ref[...] = alpha * l_ref[...] + p_sum
    m_ref[...] = m_new
    tgt_ref[...] = tgt_ref[...] + jnp.sum(one_hot * output, axis=-1,
                                          keepdims=True)

    # Running top-1 (first index of the max, like torch argmax/topk).
    tile_idx = jnp.min(jnp.where(output == tile_max, global_ids,
                                 jnp.int32(2 ** 30)),
                       axis=-1, keepdims=True)
    better = tile_max > bval_ref[...]
    bidx_ref[...] = jnp.where(better, tile_idx, bidx_ref[...])
    bval_ref[...] = jnp.where(better, tile_max, bval_ref[...])

    # ---------------- last step: ClipLoss + finalize (all f32) --------------
    @pl.when(c == n_c - 1)
    def _finalize():
        xn = xn_ref[...]
        yn = l2norm(y_ref[...])
        logit_scale = ls_ref[0, 0]

        # logits_per_image = logit_scale * xn @ yn.T   (world_size == 1)
        logits = logit_scale * jax.lax.dot_general(
            xn, yn, (((1,), (1,)), ((), ())),
            preferred_element_type=jnp.float32)           # (B, B)
        # diagonal of xn @ yn.T == rowwise dot -> no (B,B) iota mask needed
        diag_sum = logit_scale * jnp.sum(xn * yn)

        mrow = jnp.max(logits, axis=-1, keepdims=True)
        lse_row = mrow + jnp.log(jnp.sum(jnp.exp(logits - mrow), axis=-1,
                                         keepdims=True))
        mcol = jnp.max(logits, axis=0, keepdims=True)
        lse_col = mcol + jnp.log(jnp.sum(jnp.exp(logits - mcol), axis=0,
                                         keepdims=True))
        ce_img = (jnp.sum(lse_row) - diag_sum) / B
        ce_txt = (jnp.sum(lse_col) - diag_sum) / B
        closs = 0.5 * (ce_img + ce_txt)

        # AAM cross-entropy + top-1 accuracy from the online accumulators.
        lse = m_ref[...] + jnp.log(l_ref[...])
        sloss = jnp.sum(lse - tgt_ref[...]) / B
        correct = (bidx_ref[...] == lab).astype(jnp.float32)
        prec1 = 100.0 * jnp.sum(correct) / B

        nloss = 0.2 * closs + 0.8 * sloss
        nloss_ref[...] = jnp.full((1, 1), nloss, jnp.float32)
        prec_ref[...] = jnp.full((1, 1), prec1, jnp.float32)


class LossFunctionPallas:
    """JAX/Pallas port of LossFunction(nOut, nClasses, loss='infonce')."""

    def __init__(self, nOut, nClasses, key, c_tile=None):
        self.m = 0.2
        self.s = 30.0
        self.cos_m = math.cos(self.m)
        self.sin_m = math.sin(self.m)
        self.th = math.cos(math.pi - self.m)
        self.mm = math.sin(math.pi - self.m) * self.m
        # logit_scale = log(1/0.07); used raw by ClipLoss (as in the module).
        self.logit_scale = jnp.float32(math.log(1.0 / 0.07))
        # xavier_normal_(weight, gain=1): std = sqrt(2 / (fan_in + fan_out))
        std = math.sqrt(2.0 / (nClasses + nOut))
        self.weight = (jax.random.normal(key, (nClasses, nOut),
                                         dtype=jnp.float32) * std)
        self._c_tile = c_tile
        self._wt_cache = {}   # (E_pad, c_tile, C_pad) -> blocked bf16 W^T
        # NOTE: self.sub (SubcenterArcMarginProduct) is unused in forward().

    # ---------------- tiling plan (per-generation VMEM budget) --------------
    def _tile_plan(self, E_pad, C):
        C128 = _round_up(C, 128)
        if self._c_tile is not None:
            c_tile = min(_round_up(self._c_tile, 128), C128)
            C_pad = _round_up(C, c_tile)
            return c_tile, C_pad, C_pad // c_tile

        try:
            info = pltpu.get_tpu_info()
            vmem_cap = int(getattr(info, "vmem_capacity_bytes", 64 << 20))
        except Exception:
            vmem_cap = 64 << 20
        # ~4 MiB per W buffer on 128-MiB-VMEM chips (v5e/v6e), ~2 MiB on v7x.
        w_buf_budget = (4 << 20) if vmem_cap >= (100 << 20) else (2 << 20)
        bytes_per_col = 2 * E_pad                       # bf16 W^T column
        max_ct = max(128, (w_buf_budget // bytes_per_col) // 128 * 128)
        c_tile = min(C128, max_ct, 2048)                # 2048: vreg-pressure cap
        # Rebalance so the last tile is not mostly padding.
        n_tiles = _cdiv(C128, c_tile)
        c_tile = _round_up(_cdiv(C128, n_tiles), 128)
        C_pad = n_tiles * c_tile
        return c_tile, C_pad, n_tiles

    # ---------------- cached weight prep (normalize/pad/transpose/block) ----
    def _prepared_weight(self, E_pad, c_tile, C_pad, n_tiles):
        key = (E_pad, c_tile, C_pad)
        cached = self._wt_cache.get(key)
        if cached is None:
            C, E = self.weight.shape
            wn = _l2norm(self.weight).astype(jnp.bfloat16)           # (C, E)
            wt = jnp.pad(wn, ((0, C_pad - C), (0, E_pad - E))).T     # (E_pad, C_pad)
            # Pre-block so each grid step's W tile is one contiguous DMA slab
            # (rows [c*E_pad:(c+1)*E_pad], all c_tile columns) instead of
            # E_pad strided column chunks of a (E_pad, C_pad) array.
            wt = wt.reshape(E_pad, n_tiles, c_tile).transpose(1, 0, 2)
            cached = jax.block_until_ready(wt.reshape(n_tiles * E_pad, c_tile))
            self._wt_cache[key] = cached
        return cached

    def __call__(self, x, y, label):
        B, E = x.shape
        C = self.weight.shape[0]

        # Pad embedding to a lane multiple (zero-padding is a no-op for the
        # dot products and the L2 norms).
        E_pad = _round_up(E, 128)
        c_tile, C_pad, n_tiles = self._tile_plan(E_pad, C)
        wt_blocked = self._prepared_weight(E_pad, c_tile, C_pad, n_tiles)

        x_p = jnp.pad(x.astype(jnp.float32), ((0, 0), (0, E_pad - E)))
        y_p = jnp.pad(y.astype(jnp.float32), ((0, 0), (0, E_pad - E)))
        lab2d = label.reshape(B, 1).astype(jnp.int32)
        ls2d = self.logit_scale.reshape(1, 1)

        kernel = functools.partial(
            _loss_kernel, cos_m=self.cos_m, sin_m=self.sin_m, th=self.th,
            mm=self.mm, s=self.s, n_classes=C, c_tile=c_tile)

        # VMEM budget: double-buffered bf16 W tile + resident slabs + headroom.
        w_tile_bytes = 2 * E_pad * c_tile
        est = (2 * w_tile_bytes
               + 4 * B * E_pad * 4            # x, y (pipeline buffers)
               + B * E_pad * 6                # xn f32 + bf16 scratch
               + B * c_tile * 4               # iota scratch
               + 12 * B * c_tile * 4          # (B, c_tile) compute temporaries
               + B * B * 16                   # ClipLoss temporaries
               + (2 << 20))
        vmem_limit = int(min(48 << 20, max(est, 16 << 20)))

        grid_spec = pltpu.PrefetchScalarGridSpec(
            num_scalar_prefetch=0,
            grid=(n_tiles,),
            in_specs=[
                pl.BlockSpec((1, 1), lambda c: (0, 0),
                             memory_space=pltpu.MemorySpace.SMEM),  # logit_scale
                pl.BlockSpec((B, E_pad), lambda c: (0, 0)),          # x
                pl.BlockSpec((B, E_pad), lambda c: (0, 0)),          # y
                # Contiguous pre-blocked W^T slab for class tile c.
                # (pipeline_mode=pl.Buffered(3) only if a profile shows
                #  exposed DMA at small c_tile.)
                pl.BlockSpec((E_pad, c_tile), lambda c: (c, 0)),     # W^T tiles
                pl.BlockSpec((B, 1), lambda c: (0, 0)),              # label
            ],
            out_specs=(pl.BlockSpec((1, 1), lambda c: (0, 0)),
                       pl.BlockSpec((1, 1), lambda c: (0, 0))),
            scratch_shapes=[
                pltpu.VMEM((B, E_pad), jnp.float32),   # xn (f32, ClipLoss)
                pltpu.VMEM((B, E_pad), jnp.bfloat16),  # xn (bf16 MXU operand)
                pltpu.VMEM((B, c_tile), jnp.int32),    # per-tile class-id iota
                pltpu.VMEM((B, 1), jnp.float32),       # running max (m)
                pltpu.VMEM((B, 1), jnp.float32),       # running sum-exp (l)
                pltpu.VMEM((B, 1), jnp.float32),       # target logit
                pltpu.VMEM((B, 1), jnp.float32),       # best value (argmax)
                pltpu.VMEM((B, 1), jnp.int32),         # best index (argmax)
            ],
        )

        nloss, prec1 = pl.pallas_call(
            kernel,
            out_shape=(jax.ShapeDtypeStruct((1, 1), jnp.float32),
                       jax.ShapeDtypeStruct((1, 1), jnp.float32)),
            grid_spec=grid_spec,
            compiler_params=pltpu.CompilerParams(
                dimension_semantics=("arbitrary",),
                vmem_limit_bytes=vmem_limit),
        )(ls2d, x_p, y_p, wt_blocked, lab2d)

        return nloss[0, 0], self.logit_scale, prec1[0, 0]


# -------------------- pure-JAX reference for verification --------------------
def _reference(x, y, w, label, logit_scale, m=0.2, s=30.0,
               mxu_dtype=jnp.float32):
    xn, yn, wn = _l2norm(x), _l2norm(y), _l2norm(w)
    B = x.shape[0]

    def ce(logits, labels):
        lse = jax.scipy.special.logsumexp(logits, axis=-1)
        return jnp.mean(lse - logits[jnp.arange(logits.shape[0]), labels])

    logits = logit_scale * (xn @ yn.T)
    labels_clip = jnp.arange(B)
    closs = 0.5 * (ce(logits, labels_clip) + ce(logits.T, labels_clip))

    # AAM cosine in the same (optionally bf16) operand precision as the kernel,
    # with f32 accumulation.
    cosine = jnp.dot(xn.astype(mxu_dtype), wn.astype(mxu_dtype).T,
                     preferred_element_type=jnp.float32)
    sine = jnp.sqrt(jnp.clip(1.0 - cosine ** 2, 0.0, 1.0))
    cos_m, sin_m = math.cos(m), math.sin(m)
    th, mm = math.cos(math.pi - m), math.sin(math.pi - m) * m
    phi = jnp.where(cosine - th > 0, cosine * cos_m - sine * sin_m, cosine - mm)
    one_hot = jax.nn.one_hot(label, cosine.shape[1], dtype=jnp.float32)
    output = (one_hot * phi + (1.0 - one_hot) * cosine) * s
    sloss = ce(output, label)
    prec1 = 100.0 * jnp.mean((jnp.argmax(output, axis=-1) == label)
                             .astype(jnp.float32))
    return 0.2 * closs + 0.8 * sloss, prec1


if __name__ == "__main__":
    # batch=8, embedding (nOut)=32, nClasses=200 (exercises 2 class tiles +
    # padded-class masking with c_tile=128).
    B, E, C = 8, 32, 200

    key = jax.random.PRNGKey(0)
    kx, ky, kw, kl = jax.random.split(key, 4)
    x = jax.random.normal(kx, (B, E), dtype=jnp.float32)
    y = jax.random.normal(ky, (B, E), dtype=jnp.float32)
    label = jax.random.randint(kl, (B,), 0, C, dtype=jnp.int32)

    loss_fn = LossFunctionPallas(nOut=E, nClasses=C, key=kw, c_tile=128)

    nloss, logit_scale, prec1 = loss_fn(x, y, label)
    nloss, prec1 = jax.block_until_ready((nloss, prec1))

    # Primary check: reference with the same bf16 MXU operands (f32 elsewhere).
    ref_loss, ref_prec = _reference(x, y, loss_fn.weight, label,
                                    loss_fn.logit_scale,
                                    mxu_dtype=jnp.bfloat16)
    assert jnp.allclose(nloss, ref_loss, rtol=2e-3, atol=2e-3), (nloss, ref_loss)
    assert jnp.allclose(prec1, ref_prec, rtol=1e-3, atol=1e-3), (prec1, ref_prec)

    # Loose sanity check against the pure-f32 reference (bf16 W rounding).
    f32_loss, _ = _reference(x, y, loss_fn.weight, label, loss_fn.logit_scale)
    assert jnp.allclose(nloss, f32_loss, rtol=5e-2, atol=5e-2), (nloss, f32_loss)

    print("KERNEL_OK")
</pallas_src>

<mosaic_0001>
module attributes {stable_mosaic.version = 11 : i64} {
  func.func @_loss_kernel(%arg0: i32, %arg1: memref<1x1xf32, #tpu.memory_space<smem>>, %arg2: memref<8x128xf32, #tpu.memory_space<vmem>>, %arg3: memref<8x128xf32, #tpu.memory_space<vmem>>, %arg4: memref<128x128xbf16, #tpu.memory_space<vmem>>, %arg5: memref<8x1xi32, #tpu.memory_space<vmem>>, %arg6: memref<1x1xf32, #tpu.memory_space<vmem>>, %arg7: memref<1x1xf32, #tpu.memory_space<vmem>>, %arg8: memref<8x128xf32, #tpu.memory_space<vmem>>, %arg9: memref<8x128xbf16, #tpu.memory_space<vmem>>, %arg10: memref<8x128xi32, #tpu.memory_space<vmem>>, %arg11: memref<8x1xf32, #tpu.memory_space<vmem>>, %arg12: memref<8x1xf32, #tpu.memory_space<vmem>>, %arg13: memref<8x1xf32, #tpu.memory_space<vmem>>, %arg14: memref<8x1xf32, #tpu.memory_space<vmem>>, %arg15: memref<8x1xi32, #tpu.memory_space<vmem>>) attributes {dimension_semantics = [#tpu.dimension_semantics<arbitrary>], iteration_bounds = array<i64: 2>, scalar_prefetch = 0 : i64, scratch_operands = 8 : i64, tpu.core_type = #tpu.core_type<tc>, window_params = [{transform_indices = @transform_0, window_bounds = array<i64: 1, 1>}, {pipeline_mode = #tpu.pipeline_mode<synchronous>, transform_indices = @transform_1, window_bounds = array<i64: 8, 128>}, {pipeline_mode = #tpu.pipeline_mode<synchronous>, transform_indices = @transform_2, window_bounds = array<i64: 8, 128>}, {transform_indices = @transform_3, window_bounds = array<i64: 128, 128>}, {pipeline_mode = #tpu.pipeline_mode<synchronous>, transform_indices = @transform_4, window_bounds = array<i64: 8, 1>}, {pipeline_mode = #tpu.pipeline_mode<synchronous>, transform_indices = @transform_5, window_bounds = array<i64: 1, 1>}, {pipeline_mode = #tpu.pipeline_mode<synchronous>, transform_indices = @transform_6, window_bounds = array<i64: 1, 1>}]} {
    %c0_i32 = arith.constant 0 : i32
    %0 = arith.cmpi eq, %arg0, %c0_i32 : i32
    %1 = arith.extui %0 : i1 to i32
    %cst = arith.constant -1.000000e+30 : f32
    %c0_i32_0 = arith.constant 0 : i32
    %2 = arith.cmpi ne, %1, %c0_i32_0 : i32
    scf.if %2 {
      %c0_47 = arith.constant 0 : index
      %c0_48 = arith.constant 0 : index
      %87 = vector.load %arg2[%c0_47, %c0_48] : memref<8x128xf32, #tpu.memory_space<vmem>>, vector<8x128xf32>
      %88 = arith.mulf %87, %87 : vector<8x128xf32>
      %cst_49 = arith.constant dense<0.000000e+00> : vector<8xf32>
      %89 = vector.multi_reduction <add>, %88, %cst_49 [1] : vector<8x128xf32> to vector<8xf32>
      %90 = vector.shape_cast %89 : vector<8xf32> to vector<8x1xf32>
      %cst_50 = arith.constant 1.000000e-24 : f32
      %91 = vector.broadcast %cst_50 : f32 to vector<8x1xf32>
      %92 = arith.maximumf %90, %91 : vector<8x1xf32>
      %93 = math.rsqrt %92 : vector<8x1xf32>
      %94 = vector.broadcast %93 : vector<8x1xf32> to vector<8x128xf32>
      %95 = arith.mulf %87, %94 : vector<8x128xf32>
      %c0_51 = arith.constant 0 : index
      %c0_52 = arith.constant 0 : index
      %96 = vector.load %arg8[%c0_51, %c0_52] : memref<8x128xf32, #tpu.memory_space<vmem>>, vector<8x128xf32>
      tpu.vector_store %arg8[%c0_51, %c0_52], %95 {strides = array<i32>} : memref<8x128xf32, #tpu.memory_space<vmem>>, vector<8x128xf32>,
      %97 = arith.truncf %95 : vector<8x128xf32> to vector<8x128xbf16>
      %c0_53 = arith.constant 0 : index
      %c0_54 = arith.constant 0 : index
      %98 = vector.load %arg9[%c0_53, %c0_54] : memref<8x128xbf16, #tpu.memory_space<vmem>>, vector<8x128xbf16>
      tpu.vector_store %arg9[%c0_53, %c0_54], %97 {strides = array<i32>} : memref<8x128xbf16, #tpu.memory_space<vmem>>, vector<8x128xbf16>,
      %99 = tpu.iota {dimensions = array<i32: 1>} : vector<8x128xi32>
      %c0_55 = arith.constant 0 : index
      %c0_56 = arith.constant 0 : index
      %100 = vector.load %arg10[%c0_55, %c0_56] : memref<8x128xi32, #tpu.memory_space<vmem>>, vector<8x128xi32>
      tpu.vector_store %arg10[%c0_55, %c0_56], %99 {strides = array<i32>} : memref<8x128xi32, #tpu.memory_space<vmem>>, vector<8x128xi32>,
      %101 = vector.broadcast %cst : f32 to vector<8x1xf32>
      %c0_57 = arith.constant 0 : index
      %c0_58 = arith.constant 0 : index
      %102 = vector.load %arg11[%c0_57, %c0_58] : memref<8x1xf32, #tpu.memory_space<vmem>>, vector<8x1xf32>
      tpu.vector_store %arg11[%c0_57, %c0_58], %101 {strides = array<i32>} : memref<8x1xf32, #tpu.memory_space<vmem>>, vector<8x1xf32>,
      %cst_59 = arith.constant 0.000000e+00 : f32
      %103 = vector.broadcast %cst_59 : f32 to vector<8x1xf32>
      %c0_60 = arith.constant 0 : index
      %c0_61 = arith.constant 0 : index
      %104 = vector.load %arg12[%c0_60, %c0_61] : memref<8x1xf32, #tpu.memory_space<vmem>>, vector<8x1xf32>
      tpu.vector_store %arg12[%c0_60, %c0_61], %103 {strides = array<i32>} : memref<8x1xf32, #tpu.memory_space<vmem>>, vector<8x1xf32>,
      %cst_62 = arith.constant 0.000000e+00 : f32
      %105 = vector.broadcast %cst_62 : f32 to vector<8x1xf32>
      %c0_63 = arith.constant 0 : index
      %c0_64 = arith.constant 0 : index
      %106 = vector.load %arg13[%c0_63, %c0_64] : memref<8x1xf32, #tpu.memory_space<vmem>>, vector<8x1xf32>
      tpu.vector_store %arg13[%c0_63, %c0_64], %105 {strides = array<i32>} : memref<8x1xf32, #tpu.memory_space<vmem>>, vector<8x1xf32>,
      %107 = vector.broadcast %cst : f32 to vector<8x1xf32>
      %c0_65 = arith.constant 0 : index
      %c0_66 = arith.constant 0 : index
      %108 = vector.load %arg14[%c0_65, %c0_66] : memref<8x1xf32, #tpu.memory_space<vmem>>, vector<8x1xf32>
      tpu.vector_store %arg14[%c0_65, %c0_66], %107 {strides = array<i32>} : memref<8x1xf32, #tpu.memory_space<vmem>>, vector<8x1xf32>,
      %c0_i32_67 = arith.constant 0 : i32
      %109 = vector.broadcast %c0_i32_67 : i32 to vector<8x1xi32>
      %c0_68 = arith.constant 0 : index
      %c0_69 = arith.constant 0 : index
      %110 = vector.load %arg15[%c0_68, %c0_69] : memref<8x1xi32, #tpu.memory_space<vmem>>, vector<8x1xi32>
      tpu.vector_store %arg15[%c0_68, %c0_69], %109 {strides = array<i32>} : memref<8x1xi32, #tpu.memory_space<vmem>>, vector<8x1xi32>,
    } else {
    }
    %c0 = arith.constant 0 : index
    %c0_1 = arith.constant 0 : index
    %3 = vector.load %arg5[%c0, %c0_1] : memref<8x1xi32, #tpu.memory_space<vmem>>, vector<8x1xi32>
    %c0_2 = arith.constant 0 : index
    %c0_3 = arith.constant 0 : index
    %4 = vector.load %arg9[%c0_2, %c0_3] : memref<8x128xbf16, #tpu.memory_space<vmem>>, vector<8x128xbf16>
    %c0_4 = arith.constant 0 : index
    %c0_5 = arith.constant 0 : index
    %5 = vector.load %arg4[%c0_4, %c0_5] : memref<128x128xbf16, #tpu.memory_space<vmem>>, vector<128x128xbf16>
    %cst_6 = arith.constant dense<0.000000e+00> : vector<8x128xf32>
    %6 = tpu.matmul %4, %5, %cst_6 {dimension_numbers = #tpu.dot_dimension_numbers<[1], [0], [0], [1], [0, 0, 1, 1], [], []>} : vector<8x128xbf16>, vector<128x128xbf16>, vector<8x128xf32> -> vector<8x128xf32>
    %c0_7 = arith.constant 0 : index
    %c0_8 = arith.constant 0 : index
    %7 = vector.load %arg10[%c0_7, %c0_8] : memref<8x128xi32, #tpu.memory_space<vmem>>, vector<8x128xi32>
    %c128_i32 = arith.constant 128 : i32
    %8 = arith.muli %arg0, %c128_i32 : i32
    %9 = vector.broadcast %8 : i32 to vector<8x128xi32>
    %10 = arith.addi %7, %9 : vector<8x128xi32>
    %11 = vector.broadcast %3 : vector<8x1xi32> to vector<8x128xi32>
    %12 = arith.cmpi eq, %10, %11 : vector<8x128xi32>
    %13 = arith.extui %12 : vector<8x128xi1> to vector<8x128xi32>
    %14 = arith.sitofp %13 : vector<8x128xi32> to vector<8x128xf32>
    %c200_i32 = arith.constant 200 : i32
    %15 = vector.broadcast %c200_i32 : i32 to vector<8x128xi32>
    %16 = arith.cmpi slt, %10, %15 : vector<8x128xi32>
    %17 = arith.mulf %14, %6 : vector<8x128xf32>
    %cst_9 = arith.constant dense<0.000000e+00> : vector<8xf32>
    %18 = vector.multi_reduction <add>, %17, %cst_9 [1] : vector<8x128xf32> to vector<8xf32>
    %19 = vector.shape_cast %18 : vector<8xf32> to vector<8x1xf32>
    %20 = arith.mulf %19, %19 : vector<8x1xf32>
    %cst_10 = arith.constant 1.000000e+00 : f32
    %21 = vector.broadcast %cst_10 : f32 to vector<8x1xf32>
    %22 = arith.subf %21, %20 : vector<8x1xf32>
    %cst_11 = arith.constant 0.000000e+00 : f32
    %cst_12 = arith.constant 1.000000e+00 : f32
    %23 = vector.broadcast %cst_11 : f32 to vector<8x1xf32>
    %24 = arith.maximumf %23, %22 : vector<8x1xf32>
    %25 = vector.broadcast %cst_12 : f32 to vector<8x1xf32>
    %26 = arith.minimumf %25, %24 : vector<8x1xf32>
    %27 = math.sqrt %26 : vector<8x1xf32>
    %cst_13 = arith.constant 0.980066597 : f32
    %28 = vector.broadcast %cst_13 : f32 to vector<8x1xf32>
    %29 = arith.mulf %19, %28 : vector<8x1xf32>
    %cst_14 = arith.constant 0.198669329 : f32
    %30 = vector.broadcast %cst_14 : f32 to vector<8x1xf32>
    %31 = arith.mulf %27, %30 : vector<8x1xf32>
    %32 = arith.subf %29, %31 : vector<8x1xf32>
    %cst_15 = arith.constant -0.980066597 : f32
    %33 = vector.broadcast %cst_15 : f32 to vector<8x1xf32>
    %34 = arith.subf %19, %33 : vector<8x1xf32>
    %cst_16 = arith.constant 0.000000e+00 : f32
    %35 = vector.broadcast %cst_16 : f32 to vector<8x1xf32>
    %36 = arith.cmpf ogt, %34, %35 : vector<8x1xf32>
    %cst_17 = arith.constant 0.0397338644 : f32
    %37 = vector.broadcast %cst_17 : f32 to vector<8x1xf32>
    %38 = arith.subf %19, %37 : vector<8x1xf32>
    %39 = arith.select %36, %32, %38 : vector<8x1xi1>, vector<8x1xf32>
    %40 = arith.subf %39, %19 : vector<8x1xf32>
    %41 = vector.broadcast %40 : vector<8x1xf32> to vector<8x128xf32>
    %42 = arith.mulf %14, %41 : vector<8x128xf32>
    %43 = arith.addf %6, %42 : vector<8x128xf32>
    %cst_18 = arith.constant 3.000000e+01 : f32
    %44 = vector.broadcast %cst_18 : f32 to vector<8x128xf32>
    %45 = arith.mulf %44, %43 : vector<8x128xf32>
    %cst_19 = arith.constant -1.000000e+30 : f32
    %46 = vector.broadcast %cst_19 : f32 to vector<8x128xf32>
    %47 = arith.select %16, %45, %46 : vector<8x128xi1>, vector<8x128xf32>
    %c0_20 = arith.constant 0 : index
    %c0_21 = arith.constant 0 : index
    %48 = vector.load %arg11[%c0_20, %c0_21] : memref<8x1xf32, #tpu.memory_space<vmem>>, vector<8x1xf32>
    %cst_22 = arith.constant dense<0xFF800000> : vector<8xf32>
    %49 = vector.multi_reduction <maximumf>, %47, %cst_22 [1] : vector<8x128xf32> to vector<8xf32>
    %50 = vector.shape_cast %49 : vector<8xf32> to vector<8x1xf32>
    %51 = arith.maximumf %48, %50 : vector<8x1xf32>
    %52 = arith.subf %48, %51 : vector<8x1xf32>
    %53 = math.exp %52 : vector<8x1xf32>
    %54 = vector.broadcast %51 : vector<8x1xf32> to vector<8x128xf32>
    %55 = arith.subf %47, %54 : vector<8x128xf32>
    %56 = math.exp %55 : vector<8x128xf32>
    %cst_23 = arith.constant dense<0.000000e+00> : vector<8xf32>
    %57 = vector.multi_reduction <add>, %56, %cst_23 [1] : vector<8x128xf32> to vector<8xf32>
    %58 = vector.shape_cast %57 : vector<8xf32> to vector<8x1xf32>
    %c0_24 = arith.constant 0 : index
    %c0_25 = arith.constant 0 : index
    %59 = vector.load %arg12[%c0_24, %c0_25] : memref<8x1xf32, #tpu.memory_space<vmem>>, vector<8x1xf32>
    %60 = arith.mulf %53, %59 : vector<8x1xf32>
    %61 = arith.addf %60, %58 : vector<8x1xf32>
    %c0_26 = arith.constant 0 : index
    %c0_27 = arith.constant 0 : index
    %62 = vector.load %arg12[%c0_26, %c0_27] : memref<8x1xf32, #tpu.memory_space<vmem>>, vector<8x1xf32>
    tpu.vector_store %arg12[%c0_26, %c0_27], %61 {strides = array<i32>} : memref<8x1xf32, #tpu.memory_space<vmem>>, vector<8x1xf32>,
    %c0_28 = arith.constant 0 : index
    %c0_29 = arith.constant 0 : index
    %63 = vector.load %arg11[%c0_28, %c0_29] : memref<8x1xf32, #tpu.memory_space<vmem>>, vector<8x1xf32>
    tpu.vector_store %arg11[%c0_28, %c0_29], %51 {strides = array<i32>} : memref<8x1xf32, #tpu.memory_space<vmem>>, vector<8x1xf32>,
    %c0_30 = arith.constant 0 : index
    %c0_31 = arith.constant 0 : index
    %64 = vector.load %arg13[%c0_30, %c0_31] : memref<8x1xf32, #tpu.memory_space<vmem>>, vector<8x1xf32>
    %65 = arith.mulf %14, %47 : vector<8x128xf32>
    %cst_32 = arith.constant dense<0.000000e+00> : vector<8xf32>
    %66 = vector.multi_reduction <add>, %65, %cst_32 [1] : vector<8x128xf32> to vector<8xf32>
    %67 = vector.shape_cast %66 : vector<8xf32> to vector<8x1xf32>
    %68 = arith.addf %64, %67 : vector<8x1xf32>
    %c0_33 = arith.constant 0 : index
    %c0_34 = arith.constant 0 : index
    %69 = vector.load %arg13[%c0_33, %c0_34] : memref<8x1xf32, #tpu.memory_space<vmem>>, vector<8x1xf32>
    tpu.vector_store %arg13[%c0_33, %c0_34], %68 {strides = array<i32>} : memref<8x1xf32, #tpu.memory_space<vmem>>, vector<8x1xf32>,
    %70 = vector.broadcast %50 : vector<8x1xf32> to vector<8x128xf32>
    %71 = arith.cmpf oeq, %47, %70 : vector<8x128xf32>
    %c1073741824_i32 = arith.constant 1073741824 : i32
    %72 = vector.broadcast %c1073741824_i32 : i32 to vector<8x128xi32>
    %73 = arith.select %71, %10, %72 : vector<8x128xi1>, vector<8x128xi32>
    %cst_35 = arith.constant dense<2147483647> : vector<8xi32>
    %74 = vector.multi_reduction <minsi>, %73, %cst_35 [1] : vector<8x128xi32> to vector<8xi32>
    %75 = vector.shape_cast %74 : vector<8xi32> to vector<8x1xi32>
    %c0_36 = arith.constant 0 : index
    %c0_37 = arith.constant 0 : index
    %76 = vector.load %arg14[%c0_36, %c0_37] : memref<8x1xf32, #tpu.memory_space<vmem>>, vector<8x1xf32>
    %77 = arith.cmpf ogt, %50, %76 : vector<8x1xf32>
    %c0_38 = arith.constant 0 : index
    %c0_39 = arith.constant 0 : index
    %78 = vector.load %arg15[%c0_38, %c0_39] : memref<8x1xi32, #tpu.memory_space<vmem>>, vector<8x1xi32>
    %79 = arith.select %77, %75, %78 : vector<8x1xi1>, vector<8x1xi32>
    %c0_40 = arith.constant 0 : index
    %c0_41 = arith.constant 0 : index
    %80 = vector.load %arg15[%c0_40, %c0_41] : memref<8x1xi32, #tpu.memory_space<vmem>>, vector<8x1xi32>
    tpu.vector_store %arg15[%c0_40, %c0_41], %79 {strides = array<i32>} : memref<8x1xi32, #tpu.memory_space<vmem>>, vector<8x1xi32>,
    %c0_42 = arith.constant 0 : index
    %c0_43 = arith.constant 0 : index
    %81 = vector.load %arg14[%c0_42, %c0_43] : memref<8x1xf32, #tpu.memory_space<vmem>>, vector<8x1xf32>
    %82 = arith.select %77, %50, %81 : vector<8x1xi1>, vector<8x1xf32>
    %c0_44 = arith.constant 0 : index
    %c0_45 = arith.constant 0 : index
    %83 = vector.load %arg14[%c0_44, %c0_45] : memref<8x1xf32, #tpu.memory_space<vmem>>, vector<8x1xf32>
    tpu.vector_store %arg14[%c0_44, %c0_45], %82 {strides = array<i32>} : memref<8x1xf32, #tpu.memory_space<vmem>>, vector<8x1xf32>,
    %c1_i32 = arith.constant 1 : i32
    %84 = arith.cmpi eq, %arg0, %c1_i32 : i32
    %85 = arith.extui %84 : i1 to i32
    %c0_i32_46 = arith.constant 0 : i32
    %86 = arith.cmpi ne, %85, %c0_i32_46 : i32
    scf.if %86 {
      %c0_47 = arith.constant 0 : index
      %c0_48 = arith.constant 0 : index
      %87 = vector.load %arg8[%c0_47, %c0_48] : memref<8x128xf32, #tpu.memory_space<vmem>>, vector<8x128xf32>
      %c0_49 = arith.constant 0 : index
      %c0_50 = arith.constant 0 : index
      %88 = vector.load %arg3[%c0_49, %c0_50] : memref<8x128xf32, #tpu.memory_space<vmem>>, vector<8x128xf32>
      %89 = arith.mulf %88, %88 : vector<8x128xf32>
      %cst_51 = arith.constant dense<0.000000e+00> : vector<8xf32>
      %90 = vector.multi_reduction <add>, %89, %cst_51 [1] : vector<8x128xf32> to vector<8xf32>
      %91 = vector.shape_cast %90 : vector<8xf32> to vector<8x1xf32>
      %cst_52 = arith.constant 1.000000e-24 : f32
      %92 = vector.broadcast %cst_52 : f32 to vector<8x1xf32>
      %93 = arith.maximumf %91, %92 : vector<8x1xf32>
      %94 = math.rsqrt %93 : vector<8x1xf32>
      %95 = vector.broadcast %94 : vector<8x1xf32> to vector<8x128xf32>
      %96 = arith.mulf %88, %95 : vector<8x128xf32>
      %c0_53 = arith.constant 0 : index
      %c0_54 = arith.constant 0 : index
      %97 = memref.load %arg1[%c0_53, %c0_54] : memref<1x1xf32, #tpu.memory_space<smem>>
      %cst_55 = arith.constant dense<0.000000e+00> : vector<8x8xf32>
      %98 = tpu.matmul %87, %96, %cst_55 {dimension_numbers = #tpu.dot_dimension_numbers<[1], [1], [0], [0], [0, 0, 1, 0], [], []>} : vector<8x128xf32>, vector<8x128xf32>, vector<8x8xf32> -> vector<8x8xf32>
      %99 = vector.broadcast %97 : f32 to vector<8x8xf32>
      %100 = arith.mulf %99, %98 : vector<8x8xf32>
      %101 = arith.mulf %87, %96 : vector<8x128xf32>
      %102 = vector.shape_cast %101 : vector<8x128xf32> to vector<1x8x128xf32>
      %cst_56 = arith.constant dense<0.000000e+00> : vector<1xf32>
      %103 = vector.multi_reduction <add>, %102, %cst_56 [1, 2] : vector<1x8x128xf32> to vector<1xf32>
      %104 = vector.shape_cast %103 : vector<1xf32> to vector<1x1x1xf32>
      %105 = vector.extract %104[0, 0, 0] : f32 from vector<1x1x1xf32>
      %106 = arith.mulf %97, %105 : f32
      %cst_57 = arith.constant dense<0xFF800000> : vector<8xf32>
      %107 = vector.multi_reduction <maximumf>, %100, %cst_57 [1] : vector<8x8xf32> to vector<8xf32>
      %108 = vector.shape_cast %107 : vector<8xf32> to vector<8x1xf32>
      %109 = vector.broadcast %108 : vector<8x1xf32> to vector<8x8xf32>
      %110 = arith.subf %100, %109 : vector<8x8xf32>
      %111 = math.exp %110 : vector<8x8xf32>
      %cst_58 = arith.constant dense<0.000000e+00> : vector<8xf32>
      %112 = vector.multi_reduction <add>, %111, %cst_58 [1] : vector<8x8xf32> to vector<8xf32>
      %113 = vector.shape_cast %112 : vector<8xf32> to vector<8x1xf32>
      %114 = math.log %113 : vector<8x1xf32>
      %115 = arith.addf %108, %114 : vector<8x1xf32>
      %cst_59 = arith.constant dense<0xFF800000> : vector<8xf32>
      %116 = vector.multi_reduction <maximumf>, %100, %cst_59 [0] : vector<8x8xf32> to vector<8xf32>
      %117 = vector.shape_cast %116 : vector<8xf32> to vector<1x8xf32>
      %118 = vector.broadcast %117 : vector<1x8xf32> to vector<8x8xf32>
      %119 = arith.subf %100, %118 : vector<8x8xf32>
      %120 = math.exp %119 : vector<8x8xf32>
      %cst_60 = arith.constant dense<0.000000e+00> : vector<8xf32>
      %121 = vector.multi_reduction <add>, %120, %cst_60 [0] : vector<8x8xf32> to vector<8xf32>
      %122 = vector.shape_cast %121 : vector<8xf32> to vector<1x8xf32>
      %123 = math.log %122 : vector<1x8xf32>
      %124 = arith.addf %117, %123 : vector<1x8xf32>
      %125 = vector.shape_cast %115 : vector<8x1xf32> to vector<1x8x1xf32>
      %cst_61 = arith.constant dense<0.000000e+00> : vector<1xf32>
      %126 = vector.multi_reduction <add>, %125, %cst_61 [1, 2] : vector<1x8x1xf32> to vector<1xf32>
      %127 = vector.shape_cast %126 : vector<1xf32> to vector<1x1x1xf32>
      %128 = vector.extract %127[0, 0, 0] : f32 from vector<1x1x1xf32>
      %129 = arith.subf %128, %106 : f32
      %cst_62 = arith.constant 8.000000e+00 : f32
      %130 = arith.divf %129, %cst_62 : f32
      %131 = vector.shape_cast %124 : vector<1x8xf32> to vector<1x1x8xf32>
      %cst_63 = arith.constant dense<0.000000e+00> : vector<1xf32>
      %132 = vector.multi_reduction <add>, %131, %cst_63 [1, 2] : vector<1x1x8xf32> to vector<1xf32>
      %133 = vector.shape_cast %132 : vector<1xf32> to vector<1x1x1xf32>
      %134 = vector.extract %133[0, 0, 0] : f32 from vector<1x1x1xf32>
      %135 = arith.subf %134, %106 : f32
      %cst_64 = arith.constant 8.000000e+00 : f32
      %136 = arith.divf %135, %cst_64 : f32
      %137 = arith.addf %130, %136 : f32
      %cst_65 = arith.constant 5.000000e-01 : f32
      %138 = arith.mulf %cst_65, %137 : f32
      %c0_66 = arith.constant 0 : index
      %c0_67 = arith.constant 0 : index
      %139 = vector.load %arg11[%c0_66, %c0_67] : memref<8x1xf32, #tpu.memory_space<vmem>>, vector<8x1xf32>
      %c0_68 = arith.constant 0 : index
      %c0_69 = arith.constant 0 : index
      %140 = vector.load %arg12[%c0_68, %c0_69] : memref<8x1xf32, #tpu.memory_space<vmem>>, vector<8x1xf32>
      %141 = math.log %140 : vector<8x1xf32>
      %142 = arith.addf %139, %141 : vector<8x1xf32>
      %c0_70 = arith.constant 0 : index
      %c0_71 = arith.constant 0 : index
      %143 = vector.load %arg13[%c0_70, %c0_71] : memref<8x1xf32, #tpu.memory_space<vmem>>, vector<8x1xf32>
      %144 = arith.subf %142, %143 : vector<8x1xf32>
      %145 = vector.shape_cast %144 : vector<8x1xf32> to vector<1x8x1xf32>
      %cst_72 = arith.constant dense<0.000000e+00> : vector<1xf32>
      %146 = vector.multi_reduction <add>, %145, %cst_72 [1, 2] : vector<1x8x1xf32> to vector<1xf32>
      %147 = vector.shape_cast %146 : vector<1xf32> to vector<1x1x1xf32>
      %148 = vector.extract %147[0, 0, 0] : f32 from vector<1x1x1xf32>
      %cst_73 = arith.constant 8.000000e+00 : f32
      %149 = arith.divf %148, %cst_73 : f32
      %c0_74 = arith.constant 0 : index
      %c0_75 = arith.constant 0 : index
      %150 = vector.load %arg15[%c0_74, %c0_75] : memref<8x1xi32, #tpu.memory_space<vmem>>, vector<8x1xi32>
      %151 = arith.cmpi eq, %150, %3 : vector<8x1xi32>
      %152 = arith.extui %151 : vector<8x1xi1> to vector<8x1xi32>
      %153 = arith.sitofp %152 : vector<8x1xi32> to vector<8x1xf32>
      %154 = vector.shape_cast %153 : vector<8x1xf32> to vector<1x8x1xf32>
      %cst_76 = arith.constant dense<0.000000e+00> : vector<1xf32>
      %155 = vector.multi_reduction <add>, %154, %cst_76 [1, 2] : vector<1x8x1xf32> to vector<1xf32>
      %156 = vector.shape_cast %155 : vector<1xf32> to vector<1x1x1xf32>
      %157 = vector.extract %156[0, 0, 0] : f32 from vector<1x1x1xf32>
      %cst_77 = arith.constant 1.000000e+02 : f32
      %158 = arith.mulf %cst_77, %157 : f32
      %cst_78 = arith.constant 8.000000e+00 : f32
      %159 = arith.divf %158, %cst_78 : f32
      %cst_79 = arith.constant 2.000000e-01 : f32
      %160 = arith.mulf %cst_79, %138 : f32
      %cst_80 = arith.constant 8.000000e-01 : f32
      %161 = arith.mulf %cst_80, %149 : f32
      %162 = arith.addf %160, %161 : f32
      %163 = vector.broadcast %162 : f32 to vector<1x1xf32>
      %c0_81 = arith.constant 0 : index
      %c0_82 = arith.constant 0 : index
      %164 = vector.load %arg6[%c0_81, %c0_82] : memref<1x1xf32, #tpu.memory_space<vmem>>, vector<1x1xf32>
      tpu.vector_store %arg6[%c0_81, %c0_82], %163 {strides = array<i32>} : memref<1x1xf32, #tpu.memory_space<vmem>>, vector<1x1xf32>,
      %165 = vector.broadcast %159 : f32 to vector<1x1xf32>
      %c0_83 = arith.constant 0 : index
      %c0_84 = arith.constant 0 : index
      %166 = vector.load %arg7[%c0_83, %c0_84] : memref<1x1xf32, #tpu.memory_space<vmem>>, vector<1x1xf32>
      tpu.vector_store %arg7[%c0_83, %c0_84], %165 {strides = array<i32>} : memref<1x1xf32, #tpu.memory_space<vmem>>, vector<1x1xf32>,
    } else {
    }
    return
  }
  func.func @transform_0(%arg0: i32) -> (i32, i32) {
    %c0_i32 = arith.constant 0 : i32
    %c0_i32_0 = arith.constant 0 : i32
    %c0_i32_1 = arith.constant 0 : i32
    return %c0_i32, %c0_i32_0 : i32, i32
  }
  func.func @transform_1(%arg0: i32) -> (i32, i32) {
    %c0_i32 = arith.constant 0 : i32
    %c0_i32_0 = arith.constant 0 : i32
    %c0_i32_1 = arith.constant 0 : i32
    return %c0_i32, %c0_i32_0 : i32, i32
  }
  func.func @transform_2(%arg0: i32) -> (i32, i32) {
    %c0_i32 = arith.constant 0 : i32
    %c0_i32_0 = arith.constant 0 : i32
    %c0_i32_1 = arith.constant 0 : i32
    return %c0_i32, %c0_i32_0 : i32, i32
  }
  func.func @transform_3(%arg0: i32) -> (i32, i32) {
    %c0_i32 = arith.constant 0 : i32
    %c0_i32_0 = arith.constant 0 : i32
    return %arg0, %c0_i32 : i32, i32
  }
  func.func @transform_4(%arg0: i32) -> (i32, i32) {
    %c0_i32 = arith.constant 0 : i32
    %c0_i32_0 = arith.constant 0 : i32
    %c0_i32_1 = arith.constant 0 : i32
    return %c0_i32, %c0_i32_0 : i32, i32
  }
  func.func @transform_5(%arg0: i32) -> (i32, i32) {
    %c0_i32 = arith.constant 0 : i32
    %c0_i32_0 = arith.constant 0 : i32
    %c0_i32_1 = arith.constant 0 : i32
    return %c0_i32, %c0_i32_0 : i32, i32
  }
  func.func @transform_6(%arg0: i32) -> (i32, i32) {
    %c0_i32 = arith.constant 0 : i32
    %c0_i32_0 = arith.constant 0 : i32
    %c0_i32_1 = arith.constant 0 : i32
    return %c0_i32, %c0_i32_0 : i32, i32
  }
}

</mosaic_0001>

<bundles_post_ra>
// kernel: tpu_custom_call.1
= control target key start
LH: loop header
LB: loop body
LE: loop exit
PB: predicated region body
PF: predicated region fallthrough
CT: control target
= control target key end

     0   :  { %s1300_s0 = inlined_call_operand.<no memory space> [shape: f32[1,1], index: 0, kind: input, shape index: {}]   ;;  %s1301_s1 = inlined_call_operand.vmem [shape: f32[8,128], index: 1, kind: input, shape index: {}]   ;;  %s1302_s2 = inlined_call_operand.vmem [shape: f32[8,128], index: 2, kind: input, shape index: {}]   ;;  %s1303_s3 = inlined_call_operand.hbm [shape: bf16[256,128], index: 3, kind: input, shape index: {}]   ;;  %s1304_s4 = inlined_call_operand.vmem [shape: s32[8,1], index: 4, kind: input, shape index: {}]   ;;  %s1305_s5 = inlined_call_operand.hbm [shape: f32[1,1], index: 5, kind: output, shape index: {0}]   ;;  %s1306_s6 = inlined_call_operand.hbm [shape: f32[1,1], index: 6, kind: output, shape index: {1}]  }
   0x1   :  { %12 = sst [smem:[#allocation10]] %s1300_s0 }
   0x2   :  { %13 = vsyncpa [#allocation12], 0 }
   0x3   :  { %15 = vsyncpa [#allocation12 + $0x1], 0 }
   0x4   :  { %16 = vsyncpa [#allocation13], 0 }
   0x5   :  { %17 = vsyncpa [#allocation16], 0  ;;  %s1109_s23 = smov 0   ;;  %s1111_s24 = smov 0  }
   0x6   :  { %s1113_s25 = smov 0   ;;  %s1115_s26 = smov 0  }
   0x7 LB: > { %s1128_s0 = sadd.s32 4294967295, %s1056_s26   ;;  %s1131_s27 = sadd.s32 1, %s1056_s26   ;;  %s1056_s26 = sphi %s1115_s26, %s1313_s26   ;;  %s1052_s25 = sphi %s1113_s25, %s1312_s25   ;;  %s1048_s24 = sphi %s1111_s24, %s1311_s24   ;;  %s1044_s23 = sphi %s1109_s23, %s1310_s23  }
   0x8   : > { %s90_s28 = ssub.s32 %s1056_s26, %s1131_s27  ;;  %s93_s29 = sadd.s32 1, %s1052_s25 }
   0x9   : > { %p91_p0 = scmp.eq.s32.totalorder %s90_s28, 0  ;;  %p100_p1 = scmp.ne.s32.totalorder %s1052_s25, %s1048_s24 }
   0xa   : > { %p101_p2 = scmp.eq.s32.totalorder %s1056_s26, 0  ;;  %p106_p3 = scmp.ne.s32.totalorder %s1048_s24, %s1044_s23 }
   0xb   : > { %s1141_s30 = scalar_select %p91_p0, %s1052_s25, %s93_s29  }
   0xc   : > { %p102_p4 = por %p101_p2, %p100_p1  ;;  %p107_p5 = scmp.eq.s32.totalorder %s1128_s0, 0 }
   0xd   : > { %p853_p6 = scmp.lt.s32.totalorder %s1056_s26, 2  ;;  %s205_s8 = sand.u32 1, %s1052_s25  }
   0xe   : > { %p1145_p7 = por %p107_p5, %p106_p3  ;;  %s766_s9 = sshll.u32 %s205_s8, 6 }
   0xf   : > { %s792_s10 = sshll.u32 %s1056_s26, 10  ;;  %s209_s14 = scalar_lea.vmem [#allocation11], %s766_s9 }
  0x10   : > { %s1154_s13 = scalar_lea.hbm %s1303_s3, %s792_s10  ;;  %s216_s15 = sshll.u32 %s209_s14, 4  ;;  %s1156_s15 = int_to_ptr.vmem [resolvable:$true] %s216_s15 }
  0x11   : > { %p1158_p8 = pnand %p853_p6, %p102_p4  ;;  %s1163_s17 = scalar_lea.sflag [#allocation12], %s205_s8 }
  0x12   : > { %s932_s18 = scalar_lea.hbm %s1154_s13, 1024  ;;  %s937_s21 = scalar_lea.hbm %s1303_s3, 2048 }
  0x13   : > { %p933_p10 = scmp.ne.s32.totalorder %s1154_s13, %s932_s18  ;;  %p934_p11 = pneg %p1158_p8 }
  0x14   : > { %p938_p0 = scmp.lt.u32.totalorder %s1154_s13, %s1303_s3  ;;  %p939_p1 = scmp.lt.u32.totalorder %s937_s21, %s932_s18 }
  0x15   : > { %p935_p12 = pnand %p934_p11, %p933_p10  ;;  %p941_p3 = scmp.lt.u32.totalorder %s932_s18, %s1154_s13 }
  0x16   : > { %p940_p2 = por %p939_p1, %p938_p0 }
  0x17   : > { %p936_p13 = pneg %p935_p12 }
  0x18   : > { %p942_p4 = por %p941_p3, %p940_p2 }
  0x1a   : > { %p943_p5 = pnand %p942_p4, %p936_p13 }
  0x1c   : > { %946 = shalt.err (!%p943_p5)
}
  0x1d   : > { %s947_s28 = scalar_lea.vmem %s1156_s15, 1024  ;;  %s1058_s29 = smov [#allocation11]  }
  0x1e   : > { %p948_p6 = scmp.ne.s32.totalorder %s1156_s15, %s947_s28  ;;  %s952_s8 = sshll.u32 %s1058_s29, 4  ;;  %s953_s8 = int_to_ptr.vmem [resolvable:$false] %s952_s8 }
  0x1f   : > { %s954_s9 = scalar_lea.vmem %s953_s8, 2048  ;;  %p955_p9 = scmp.lt.s32.totalorder %s1156_s15, %s953_s8 }
  0x20   : > { %p950_p10 = pnand %p948_p6, %p934_p11  ;;  %p956_p0 = scmp.lt.s32.totalorder %s954_s9, %s947_s28 }
  0x22   : > { %p951_p12 = pneg %p950_p10  ;;  %p957_p1 = por %p956_p0, %p955_p9 }
  0x24   : > { %p958_p2 = pnand %p957_p1, %p951_p12 }
  0x26   : > { %961 = shalt.err (!%p958_p2)
}
  0x27   : > { %s1059_s10 = smov 64   ;;  %s1060_s11 = smov 4  }
  0x28   : > { %852 = dma.hbm_to_vmem [thread:$0]  (!%p1158_p8), %s1154_s13, 1024, %s1156_s15, %s1163_s17, %s1059_s10, %s1059_s10, %s1060_s11  }
  0x29   : > { %p224_p11 = scmp.lt.s32.totalorder %s1056_s26, 3  ;;  %p1309_p13 = scmp.ge.s32.totalorder %s1056_s26, 1 }
  0x2b   : > { %p225_p3 = pnand %p1309_p13, %p224_p11 }
  0x2c   : > { %s230_s12 = sand.u32 (!%p225_p3), 1, %s1048_s24  }
  0x2d   : > { %228 = sbr.rel (%p225_p3) target bundleno = 1933 (0x78d), region = 40  ;;  %s770_s14 = sshll.u32 (!%p225_p3), %s230_s12, 6 }
  0x2e   : > { %s231_s18 = scalar_lea.sflag (!%p225_p3), [#allocation12], %s230_s12  ;;  %s1195_s19 = scalar_lea.vmem (!%p225_p3), [#allocation11], %s770_s14 }
  0x34   : > { %1031 = dma.done.wait (%p1145_p7), %s231_s18, 1024  }
  0x35   : > { %1033 = vsyncadd (%p1145_p7), %s231_s18, 4294966272  ;;  %p771_p9 = scmp.ne.s32.totalorder %s1128_s0, 0 }
  0x36   : > { %v264_v0 = vld [vmem:[%s1301_s1] sm:$0xff] (!%p771_p9)  ;;  %v274_v2 = vlaneseq (!%p771_p9)  ;;  %vm277_vm0 = vcmask (!%p771_p9), 7168   ;;  %v1061_v4 = vmov (!%p771_p9), -1e+30   ;;  %v1062_v5 = vmov (!%p771_p9), 0.0  }
  0x37   : > { %263 = sbr.rel (%p771_p9) target bundleno = 217 (0xd9), region = 48  ;;  %v265_v1 = vmul.f32 (!%p771_p9), %v264_v0, %v264_v0  ;;  %278 = vst.msk [vmem:[#allocation5] sm:$0xff] (!%p771_p9), %vm277_vm0, %v1061_v4  ;;  %279 = vst.msk [vmem:[#allocation6] sm:$0xff] (!%p771_p9), %vm277_vm0, %v1062_v5  ;;  %v1063_v6 = vmov (!%p771_p9), 0  }
  0x38   : > { %v275_v3 = vand.u32 (!%p771_p9), 127, %v274_v2  ;;  %280 = vst.msk [vmem:[#allocation7] sm:$0xff] (!%p771_p9), %vm277_vm0, %v1062_v5  ;;  %281 = vst.msk [vmem:[#allocation8] sm:$0xff] (!%p771_p9), %vm277_vm0, %v1061_v4 }
  0x39   : > { %266 = vadd.xlane.f32.xlu0 (!%p771_p9), %v265_v1  ;;  %282 = vst.msk [vmem:[#allocation9] sm:$0xff] (!%p771_p9), %vm277_vm0, %v1063_v6 }
  0x3a   : > { %276 = vst [vmem:[#allocation4] sm:$0xff] (!%p771_p9), %v275_v3 }
  0xc6   : > { %v267_v7 = vpop.xlane.xlu0 %266 }
  0xc7   : > { %v268_v8 = vmax.f32 %v267_v7, 1e-24 }
  0xc9   : > { %902 = vrsqrt.f32 %v268_v8 }
  0xd3   : > { %v903_v9 = vpop.eup %902 }
  0xd4   : > { %v270_v10 = vmul.f32 %v903_v9, %v264_v0 }
  0xd6   : > { %271 = vst [vmem:[#allocation2] sm:$0xff] %v270_v10  ;;  %v272_v11 = vpack.c.bf16 %v270_v10, %v270_v10 }
  0xd8   : > { %273 = vst [vmem:[#allocation3] sm:$0xf] %v272_v11 }
  0xd9 PF: > { %v906_v12 = vld [vmem:[%s1195_s19] sm:$0xff]   ;;  %v1064_v13 = vmov 0.0   ;;  %v907_v14 = vld [vmem:[%s1195_s19 + $0x8] sm:$0xff]   ;;  %vm1065_vm1 = vmmov 0   ;;  %v1066_v15 = vmov 0   ;;  %v908_v16 = vld [vmem:[%s1195_s19 + $0x10] sm:$0xff]  }
  0xda   : > { %804 = vmatprep.subr.bf16.mxu0 %v1064_v13  ;;  %820 = vmatprep.mubr.msk.bf16.mxu0 %vm1065_vm1, %v1064_v13  ;;  %v1211_v17 = vld [vmem:[%s1304_s4] sm:$0xff]  ;;  %v909_v18 = vld [vmem:[%s1195_s19 + $0x18] sm:$0xff]   ;;  %v912_v21 = vld [vmem:[%s1195_s19 + $0x30] sm:$0xff]   ;;  %s780_s16 = sshll.u32 %s1128_s0, 7  ;;  %vm446_vm7 = vcmask 7168   ;;  %p784_p7 = scmp.ne.s32.totalorder %s1128_s0, 1 }
  0xdb   : > { %805 = vmatpush3.bf16.msra.mxu0 %v906_v12  ;;  %904 = vset.pattern.permute.xlu0 %v1066_v15  ;;  %v910_v19 = vld [vmem:[%s1195_s19 + $0x20] sm:$0xff]   ;;  %v911_v20 = vld [vmem:[%s1195_s19 + $0x28] sm:$0xff]   ;;  %v913_v22 = vld [vmem:[%s1195_s19 + $0x38] sm:$0xff]   ;;  %v391_v25 = vstv %s780_s16  ;;  %vm1068_vm11 = vmmov (!%p784_p7), 0   ;;  %s1231_s21 = sld [smem:[#allocation10]] (!%p784_p7)  ;;  %vm575_vm12 = vcmask (!%p784_p7), 64512  }
  0xdc   : > { %806 = vmatprep.subr.bf16.mxu0 %v1064_v13  ;;  %905 = vset.pattern.permute.xlu1 %v1066_v15  ;;  %v389_v24 = vld [vmem:[#allocation4] sm:$0xff]  ;;  %v426_v56 = vld [vmem:[#allocation5] sm:$0xff]  ;;  %v443_v11 = vld [vmem:[#allocation6] sm:$0xff]  ;;  %vm621_vm13 = vcmask (!%p784_p7), 57344   ;;  %vm680_vm15 = vcmask (!%p784_p7), 0  }
  0xdd   : > { %394 = vperm.xlu0 %904, %v1211_v17   ;;  %v392_v26 = vadd.s32 %v391_v25, %v389_v24  ;;  %v471_v55 = vld [vmem:[#allocation8] sm:$0xff] }
  0xdf   : > { %807 = vmatpush3.bf16.msra.mxu0 %v907_v14  ;;  %v284_v23 = vld [vmem:[#allocation3] sm:$0xf]  ;;  %vm399_vm6 = vcmp.lt.s32.totalorder %v392_v26, 200 }
  0xe0   : > { %808 = vmatprep.subr.bf16.mxu0 %v1064_v13 }
  0xe3   : > { %809 = vmatpush3.bf16.msra.mxu0 %v908_v16 }
  0xe4   : > { %810 = vmatprep.subr.bf16.mxu0 %v1064_v13 }
  0xe7   : > { %811 = vmatpush3.bf16.msra.mxu0 %v909_v18 }
  0xe8   : > { %812 = vmatprep.subr.bf16.mxu0 %v1064_v13 }
  0xeb   : > { %813 = vmatpush3.bf16.msra.mxu0 %v910_v19 }
  0xec   : > { %814 = vmatprep.subr.bf16.mxu0 %v1064_v13 }
  0xef   : > { %815 = vmatpush3.bf16.msra.mxu0 %v911_v20  ;;  %v473_v20 = vld [vmem:[#allocation9] sm:$0xff] }
  0xf0   : > { %816 = vmatprep.subr.bf16.mxu0 %v1064_v13 }
  0xf3   : > { %817 = vmatpush3.bf16.msra.mxu0 %v912_v21  ;;  %v449_v21 = vld [vmem:[#allocation7] sm:$0xff] }
  0xf4   : > { %818 = vmatprep.subr.bf16.mxu0 %v1064_v13 }
  0xf7   : > { %819 = vmatpush3.bf16.msra.mxu0 %v913_v22 }
  0xfa   : > { %821 = vmatmul.mubr.bf16.vlgmr.msra.gmra.mrb[0].mxu0 %v284_v23 }
 0x15c   : > { %v395_v27 = vpop.permute.xlu0 %394 }
 0x15d   : > { %vm396_vm2 = vcmp.eq.s32.totalorder %v392_v26, %v395_v27 }
 0x15e   : > { %v781_v28 = vsel %vm396_vm2, 1.0, %v1064_v13 }
 0x1cd   : > { %v383_v29 = vpop.f32.mrb[0].mxu0 }
 0x1ce   : > { %v822_v30 = vpop.f32.mrb[1].mxu0  ;;  %v400_v31 = vmul.f32 %v781_v28, %v383_v29 }
 0x1cf   : > { %v386_v32 = vpop.f32.mrb[2].mxu0 }
 0x1d0   : > { %v823_v33 = vpop.f32.mrb[3].mxu0  ;;  %401 = vadd.xlane.f32.xlu0 %v400_v31  ;;  %v483_v32 = vld [vmem:[#allocation2] sm:$0xff] (!%p784_p7) }
 0x25d   : > { %v402_v34 = vpop.xlane.xlu0 %401 }
 0x25e   : > { %v403_v35 = vmul.f32 %v402_v34, %v402_v34  ;;  %v782_v44 = vadd.f32 0.9800666, %v402_v34  ;;  %v414_v45 = vmul.f32 0.9800666, %v402_v34  ;;  %v783_v48 = vadd.f32 -0.039733864, %v402_v34 }
 0x260   : > { %v404_v36 = vsub.f32 1.0, %v403_v35  ;;  %vm418_vm5 = vcmp.gt.f32.partialorder %v782_v44, 0.0  ;;  %v562_v35 = vstv (!%p784_p7), %s1231_s21 }
 0x262   : > { %v405_v37 = vmax.f32 %v404_v36, 0.0 }
 0x264   : > { %v406_v38 = vmin.f32 %v405_v37, 1.0 }
 0x266   : > { %914 = vrsqrt.f32 %v406_v38  ;;  %vm409_vm3 = vcmp.eq.f32.partialorder %v406_v38, inf  ;;  %v412_v41 = vand.u32 2147483648, %v406_v38  ;;  %vm411_vm4 = vcmp.eq.f32.partialorder %v406_v38, 0.0 }
 0x270   : > { %v915_v39 = vpop.eup %914 }
 0x271   : > { %v408_v40 = vmul.f32 %v915_v39, %v406_v38 }
 0x273   : > { %v410_v42 = vsel %vm409_vm3, %v406_v38, %v408_v40 }
 0x274   : > { %v413_v43 = vsel %vm411_vm4, %v412_v41, %v410_v42 }
 0x275   : > { %v415_v46 = vmul.f32 0.19866933, %v413_v43 }
 0x277   : > { %v416_v47 = vsub.f32 %v414_v45, %v415_v46 }
 0x279   : > { %v420_v49 = vsel %vm418_vm5, %v416_v47, %v783_v48 }
 0x27a   : > { %v421_v50 = vsub.f32 %v420_v49, %v402_v34 }
 0x27c   : > { %v422_v51 = vmul.f32 %v781_v28, %v421_v50 }
 0x27e   : > { %v423_v52 = vadd.f32 %v422_v51, %v383_v29 }
 0x280   : > { %v424_v53 = vmul.f32 30.0, %v423_v52 }
 0x282   : > { %v425_v54 = vsel %vm399_vm6, %v424_v53, -1e+30 }
 0x283   : > { %427 = vmax.xlane.f32.xlu1 %v425_v54  ;;  %v450_v8 = vmul.f32 %v781_v28, %v425_v54  ;;  %v1067_v28 = vmov (!%p784_p7), 0.0  }
 0x284   : > { %824 = vmatprep.subr.mxu0 (!%p784_p7), %v1067_v28  ;;  %826 = vmatprep.mubr.msk.f32.mxu0 (!%p784_p7), %vm1068_vm11, %v1067_v28 }
 0x310   : > { %v428_v57 = vpop.xlane.xlu1 %427 }
 0x311   : > { %vm472_vm8 = vcmp.gt.f32.partialorder %v428_v57, %v471_v55  ;;  %v429_v58 = vmax.f32 %v426_v56, %v428_v57  ;;  %vm455_vm9 = vcmp.eq.f32.partialorder %v425_v54, %v428_v57 }
 0x312   : > { %v477_v59 = vsel %vm472_vm8, %v428_v57, %v471_v55  ;;  %v456_v61 = vsel %vm455_vm9, %v392_v26, 1073741824  ;;  %v484_v26 = vld [vmem:[%s1302_s2] sm:$0xff] (!%p784_p7) }
 0x313   : > { %478 = vst.msk [vmem:[#allocation8] sm:$0xff] %vm446_vm7, %v477_v59  ;;  %435 = vperm.xlu1 %905, %v429_v58   ;;  %v430_v60 = vsub.f32 %v426_v56, %v429_v58  ;;  %448 = vst.msk [vmem:[#allocation5] sm:$0xff] %vm446_vm7, %v429_v58  ;;  %v458_v62 = vshra.s32 %v456_v61, 16  ;;  %v457_v4 = vand.u32 65535, %v456_v61  ;;  %v485_v27 = vmul.f32 (!%p784_p7), %v484_v26, %v484_v26 }
 0x315   : > { %v460_v63 = vcvt.s32.f32 %v458_v62  ;;  %v459_v6 = vcvt.s32.f32 %v457_v4  ;;  %v431_v9 = vmul.f32 1.442695, %v430_v60 }
 0x337   : > { %461 = vmin.xlane.f32.xlu1 %v460_v63 }
 0x392   : > { %v436_v0 = vpop.permute.xlu1 %435 }
 0x393   : > { %v438_v1 = vsub.f32 %v425_v54, %v436_v0 }
 0x395   : > { %v439_v2 = vmul.f32 1.442695, %v438_v1 }
 0x397   : > { %916 = vpow2.f32 %v439_v2 }
 0x398   : > { %918 = vpow2.f32 %v431_v9 }
 0x3a1   : > { %v917_v3 = vpop.eup %916 }
 0x3a2   : > { %441 = vadd.xlane.f32.xlu0 %v917_v3  ;;  %v919_v10 = vpop.eup %918 }
 0x3a3   : > { %v444_v12 = vmul.f32 %v919_v10, %v443_v11  ;;  %v638_v11 = vld [vmem:[#allocation5] sm:$0xff] (!%p784_p7) }
 0x3c4   : > { %v462_v5 = vpop.xlane.xlu1 %461 }
 0x3c5   : > { %vm463_vm10 = vcmp.eq.f32.partialorder %v460_v63, %v462_v5  ;;  %v468_v15 = vcvt.f32.s32 %v462_v5 }
 0x3c6   : > { %v464_v7 = vsel %vm463_vm10, %v459_v6, inf }
 0x3c7   : > { %465 = vmin.xlane.f32.xlu0 %v464_v7  ;;  %v469_v18 = vshll.u32 %v468_v15, 16 }
 0x3cb   : > { %451 = vadd.xlane.f32.xlu0 %v450_v8 }
 0x3cf   : > { %486 = vadd.xlane.f32.xlu0 (!%p784_p7), %v485_v27 }
 0x42f   : > { %v442_v13 = vpop.xlane.xlu0 %441 }
 0x430   : > { %v445_v14 = vadd.f32 %v444_v12, %v442_v13 }
 0x432   : > { %447 = vst.msk [vmem:[#allocation6] sm:$0xff] %vm446_vm7, %v445_v14 }
 0x439   : > { %v639_v4 = vld [vmem:[#allocation6] sm:$0xff] (!%p784_p7) }
 0x454   : > { %v466_v16 = vpop.xlane.xlu0 %465 }
 0x455   : > { %v467_v19 = vcvt.f32.s32 %v466_v16  ;;  %482 = sbr.rel (%p784_p7) target bundleno = 1885 (0x75d), region = 52 }
 0x457   : > { %v470_v22 = vadd.s32 %v469_v18, %v467_v19 }
 0x458   : > { %v452_v23 = vpop.xlane.xlu0 %451 }
 0x459   : > { %v474_v24 = vsel %vm472_vm8, %v470_v22, %v473_v20  ;;  %v453_v25 = vadd.f32 %v452_v23, %v449_v21 }
 0x45a   : > { %475 = vst.msk [vmem:[#allocation9] sm:$0xff] %vm446_vm7, %v474_v24 }
 0x45b   : > { %454 = vst.msk [vmem:[#allocation7] sm:$0xff] %vm446_vm7, %v453_v25 }
 0x45c   : > { %v487_v29 = vpop.xlane.xlu0 %486 }
 0x45d   : > { %v488_v30 = vmax.f32 %v487_v29, 1e-24 }
 0x45f   : > { %920 = vrsqrt.f32 %v488_v30 }
 0x461   : > { %v658_v1 = vld [vmem:[#allocation9] sm:$0xff] }
 0x462   : > { %vm659_vm14 = vcmp.eq.s32.totalorder %v658_v1, %v1211_v17  ;;  %v643_v16 = vld [vmem:[#allocation7] sm:$0xff] }
 0x463   : > { %v785_v2 = vsel %vm659_vm14, 1.0, %v1067_v28 }
 0x464   : > { %v662_v3 = vsel %vm446_vm7, %v785_v2, 0.0 }
 0x469   : > { %v921_v31 = vpop.eup %920 }
 0x46a   : > { %v490_v33 = vmul.f32 %v921_v31, %v484_v26 }
 0x46c   : > { %825 = vmatpush3.xpose.msra.mxu0 %v490_v33  ;;  %v564_v34 = vmul.f32 %v490_v33, %v483_v32 }
 0x46f   : > { %827 = vmatmul.mubr.f32.vlgmr.msra.gmra.mrb[0].mxu0 %v483_v32 }
 0x542   : > { %v558_v36 = vpop.f32.mrb[0].mxu0 }
 0x543   : > { %v563_v37 = vmul.f32 %v562_v35, %v558_v36  ;;  %v828_v38 = vpop.f32.mrb[1].mxu0 }
 0x545   : > { %v576_v39 = vsel %vm575_vm12, %v563_v37, -inf }
 0x546   : > { %577 = vmax.xlane.f32.xlu0 %v576_v39  ;;  %v588_v40 = vrot.slane %v576_v39, 4 }
 0x548   : > { %v589_v41 = vmax.f32 %v576_v39, %v588_v40 }
 0x54a   : > { %v590_v42 = vrot.slane %v589_v41, 2 }
 0x54c   : > { %v591_v43 = vmax.f32 %v589_v41, %v590_v42 }
 0x54e   : > { %v592_v44 = vrot.slane %v591_v43, 1 }
 0x550   : > { %v593_v45 = vmax.f32 %v591_v43, %v592_v44 }
 0x552   : > { %v594_v46 = vsub.f32 %v563_v37, %v593_v45 }
 0x554   : > { %v595_v47 = vmul.f32 1.442695, %v594_v46 }
 0x556   : > { %922 = vpow2.f32 %v595_v47 }
 0x560   : > { %v923_v48 = vpop.eup %922 }
 0x561   : > { %v597_v49 = vsel %vm575_vm12, %v923_v48, 0.0 }
 0x562   : > { %v598_v50 = vrot.slane %v597_v49, 4 }
 0x564   : > { %v599_v51 = vadd.f32 %v598_v50, %v597_v49 }
 0x566   : > { %v600_v52 = vrot.slane %v599_v51, 2 }
 0x568   : > { %v601_v53 = vadd.f32 %v600_v52, %v599_v51 }
 0x56a   : > { %v602_v54 = vrot.slane %v601_v53, 1 }
 0x56c   : > { %v603_v55 = vadd.f32 %v602_v54, %v601_v53 }
 0x56e   : > { %924 = vlog2.f32 %v603_v55 }
 0x578   : > { %v925_v59 = vpop.eup %924 }
 0x579   : > { %v605_v62 = vmul.f32 0.6931472, %v925_v59 }
 0x57b   : > { %v606_v63 = vadd.f32 %v605_v62, %v593_v45 }
 0x57d   : > { %v622_v0 = vsel %vm621_vm13, %v606_v63, 0.0 }
 0x5d3   : > { %v578_v56 = vpop.xlane.xlu0 %577 }
 0x5d4   : > { %v579_v57 = vsub.f32 %v563_v37, %v578_v56 }
 0x5d6   : > { %v580_v58 = vmul.f32 1.442695, %v579_v57 }
 0x5d8   : > { %926 = vpow2.f32 %v580_v58 }
 0x5d9   : > { %928 = vlog2.f32 %v639_v4 }
 0x5e2   : > { %v927_v60 = vpop.eup %926 }
 0x5e3   : > { %v582_v61 = vsel %vm575_vm12, %v927_v60, 0.0  ;;  %v929_v6 = vpop.eup %928 }
 0x5e4   : > { %583 = vadd.xlane.f32.xlu1 %v582_v61  ;;  %v641_v9 = vmul.f32 0.6931472, %v929_v6 }
 0x5e6   : > { %v642_v13 = vadd.f32 %v641_v9, %v638_v11 }
 0x5e8   : > { %565 = vadd.xlane.f32.xlu1 %v564_v34  ;;  %v644_v20 = vsub.f32 %v642_v13, %v643_v16 }
 0x5ea   : > { %v645_v23 = vsel %vm446_vm7, %v644_v20, 0.0 }
 0x5ec   : > { %623 = vadd.xlane.f32.xlu1 %v622_v0 }
 0x5f0   : > { %663 = vadd.xlane.f32.xlu1 %v662_v3 }
 0x671   : > { %v584_v5 = vpop.xlane.xlu1 %583 }
 0x672   : > { %930 = vlog2.f32 %v584_v5 }
 0x675   : > { %v566_v7 = vpop.xlane.xlu1 %565 }
 0x676   : > { %v567_v8 = vrot.slane %v566_v7, 4 }
 0x678   : > { %v568_v10 = vadd.f32 %v567_v8, %v566_v7 }
 0x679   : > { %v624_v24 = vpop.xlane.xlu1 %623 }
 0x67a   : > { %v569_v12 = vrot.slane %v568_v10, 2  ;;  %v625_v25 = vrot.slane %v624_v24, 4 }
 0x67c   : > { %v931_v14 = vpop.eup %930  ;;  %v570_v15 = vadd.f32 %v569_v12, %v568_v10  ;;  %v626_v27 = vadd.f32 %v625_v25, %v624_v24 }
 0x67d   : > { %v586_v17 = vmul.f32 0.6931472, %v931_v14  ;;  %v664_v26 = vpop.xlane.xlu1 %663 }
 0x67e   : > { %v571_v18 = vrot.slane %v570_v15, 1  ;;  %v665_v28 = vrot.slane %v664_v26, 4  ;;  %v627_v29 = vrot.slane %v626_v27, 2 }
 0x67f   : > { %v587_v19 = vadd.f32 %v586_v17, %v578_v56 }
 0x680   : > { %v572_v21 = vadd.f32 %v571_v18, %v570_v15  ;;  %v666_v31 = vadd.f32 %v665_v28, %v664_v26  ;;  %v628_v36 = vadd.f32 %v627_v29, %v626_v27 }
 0x681   : > { %v607_v22 = vsel %vm446_vm7, %v587_v19, 0.0 }
 0x682   : > { %608 = vadd.xlane.f32.xlu0 %v607_v22  ;;  %829 = vpush %v572_v21  ;;  %v667_v34 = vrot.slane %v666_v31, 2  ;;  %v629_v42 = vrot.slane %v628_v36, 1 }
 0x684   : > { %v668_v41 = vadd.f32 %v667_v34, %v666_v31  ;;  %v630_v47 = vadd.f32 %v629_v42, %v628_v36 }
 0x686   : > { %646 = vadd.xlane.f32.xlu0 %v645_v23  ;;  %v669_v48 = vrot.slane %v668_v41, 1 }
 0x688   : > { %v670_v51 = vadd.f32 %v669_v48, %v668_v41 }
 0x6b3   : > { %s830_s22 = spop %829 }
 0x6b4   : > { %s574_s23 = smul.f32 %s830_s22, %s1231_s21 }
 0x70f   : > { %v609_v30 = vpop.xlane.xlu0 %608 }
 0x710   : > { %v610_v32 = vrot.slane %v609_v30, 4 }
 0x712   : > { %v611_v33 = vadd.f32 %v610_v32, %v609_v30 }
 0x713   : > { %v647_v35 = vpop.xlane.xlu0 %646 }
 0x714   : > { %v612_v37 = vrot.slane %v611_v33, 2  ;;  %v648_v38 = vrot.slane %v647_v35, 4 }
 0x716   : > { %v649_v39 = vadd.f32 %v648_v38, %v647_v35  ;;  %v613_v40 = vadd.f32 %v612_v37, %v611_v33 }
 0x718   : > { %v650_v43 = vrot.slane %v649_v39, 2  ;;  %v614_v44 = vrot.slane %v613_v40, 1 }
 0x71a   : > { %v651_v45 = vadd.f32 %v650_v43, %v649_v39  ;;  %v615_v46 = vadd.f32 %v614_v44, %v613_v40 }
 0x71c   : > { %831 = vpush %v615_v46  ;;  %v652_v49 = vrot.slane %v651_v45, 1 }
 0x71d   : > { %833 = vpush %v630_v47 }
 0x71e   : > { %v653_v50 = vadd.f32 %v652_v49, %v651_v45 }
 0x720   : > { %835 = vpush %v653_v50 }
 0x721   : > { %837 = vpush %v670_v51 }
 0x74d   : > { %s832_s28 = spop %831 }
 0x74e   : > { %s617_s29 = ssub.f32 %s832_s28, %s574_s23  ;;  %s834_s8 = spop %833 }
 0x74f   : > { %s632_s9 = ssub.f32 %s834_s8, %s574_s23 }
 0x750   : > { %s620_s10 = smul.f32 0.125, %s617_s29 }
 0x751   : > { %s635_s11 = smul.f32 0.125, %s632_s9  ;;  %s836_s12 = spop %835 }
 0x752   : > { %s657_s14 = smul.f32 0.125, %s836_s12  ;;  %s838_s18 = spop %837 }
 0x753   : > { %s636_s19 = sadd.f32 %s635_s11, %s620_s10  ;;  %s672_s13 = smul.f32 100.0, %s838_s18 }
 0x754   : > { %s677_s15 = smul.f32 0.8, %s657_s14 }
 0x755   : > { %s637_s26 = smul.f32 0.5, %s636_s19 }
 0x756   : > { %s675_s7 = smul.f32 0.125, %s672_s13 }
 0x757   : > { %s676_s16 = smul.f32 0.2, %s637_s26 }
 0x758   : > { %v682_v52 = vstv %s675_s7 }
 0x759   : > { %s678_s17 = sadd.f32 %s677_s15, %s676_s16  ;;  %683 = vst.msk [vmem:[#allocation15] sm:$0x1] %vm680_vm15, %v682_v52 }
 0x75b   : > { %v679_v53 = vstv %s678_s17 }
 0x75c   : > { %681 = vst.msk [vmem:[#allocation14] sm:$0x1] %vm680_vm15, %v679_v53 }
 0x75d PF: > { %p854_p8 = scmp.eq.s32.totalorder %s1128_s0, 1  ;;  %s1069_s20 = smov [#allocation14]  }
 0x75e   : > { %s691_s21 = sshll.u32 %s1069_s20, 4  ;;  %s1070_s22 = smov [#allocation15]   ;;  %s692_s21 = int_to_ptr.vmem [resolvable:$true] %s691_s21 }
 0x75f   : > { %s702_s23 = sshll.u32 %s1070_s22, 4  ;;  %s962_s28 = scalar_lea.vmem %s692_s21, 16  ;;  %s703_s23 = int_to_ptr.vmem [resolvable:$true] %s702_s23 }
 0x760   : > { %p963_p4 = scmp.ne.s32.totalorder %s692_s21, %s962_s28  ;;  %s968_s29 = scalar_lea.vmem %s692_s21, 32 }
 0x761   : > { %p969_p10 = scmp.lt.s32.totalorder %s692_s21, %s692_s21  ;;  %p970_p12 = scmp.lt.s32.totalorder %s968_s29, %s962_s28 }
 0x762   : > { %p964_p5 = pnand %p963_p4, %p854_p8 }
 0x763   : > { %p971_p0 = por %p970_p12, %p969_p10 }
 0x764   : > { %p965_p6 = pneg %p964_p5 }
 0x766   : > { %p972_p1 = pnand %p971_p0, %p965_p6 }
 0x768   : > { %975 = shalt.err (!%p972_p1)
}
 0x769   : > { %s976_s10 = scalar_lea.hbm %s1305_s5, 16 }
 0x76a   : > { %p977_p2 = scmp.ne.s32.totalorder %s1305_s5, %s976_s10  ;;  %p982_p3 = scmp.lt.u32.totalorder %s976_s10, %s1305_s5 }
 0x76c   : > { %p978_p11 = pnand %p977_p2, %p854_p8 }
 0x76e   : > { %p979_p13 = pneg %p978_p11 }
 0x770   : > { %p984_p9 = pnand %p982_p3, %p979_p13 }
 0x772   : > { %987 = shalt.err (!%p984_p9)
}
 0x773   : > { %842 = dma.vmem_to_hbm [thread:$0]  (%p854_p8), %s692_s21, 16, %s1305_s5, [#allocation13]  }
 0x774   : > { %s988_s15 = scalar_lea.vmem %s703_s23, 16  ;;  %s994_s26 = scalar_lea.vmem %s703_s23, 32 }
 0x775   : > { %p989_p7 = scmp.ne.s32.totalorder %s703_s23, %s988_s15  ;;  %p995_p6 = scmp.lt.s32.totalorder %s703_s23, %s703_s23 }
 0x776   : > { %p996_p10 = scmp.lt.s32.totalorder %s994_s26, %s988_s15 }
 0x777   : > { %p990_p4 = pnand %p989_p7, %p854_p8 }
 0x778   : > { %p997_p12 = por %p996_p10, %p995_p6 }
 0x779   : > { %p991_p5 = pneg %p990_p4 }
 0x77b   : > { %p998_p0 = pnand %p997_p12, %p991_p5 }
 0x77d   : > { %1001 = shalt.err (!%p998_p0)
}
 0x77e   : > { %s1002_s17 = scalar_lea.hbm %s1306_s6, 16 }
 0x77f   : > { %p1003_p1 = scmp.ne.s32.totalorder %s1306_s6, %s1002_s17  ;;  %p1008_p13 = scmp.lt.u32.totalorder %s1002_s17, %s1306_s6 }
 0x781   : > { %p1004_p2 = pnand %p1003_p1, %p854_p8 }
 0x783   : > { %p1005_p11 = pneg %p1004_p2 }
 0x785   : > { %p1010_p3 = pnand %p1008_p13, %p1005_p11 }
 0x787   : > { %1013 = shalt.err (!%p1010_p3)
}
 0x788   : > { %844 = dma.vmem_to_hbm [thread:$0]  (%p854_p8), %s703_s23, 16, %s1306_s6, [#allocation16]  }
 0x789   : > { %1035 = dma.done.wait (%p854_p8), [#allocation13], 16  }
 0x78a   : > { %1037 = vsyncadd (%p854_p8), [#allocation13], 4294967280 }
 0x78b   : > { %1039 = dma.done.wait (%p854_p8), [#allocation16], 16  }
 0x78c   : > { %1041 = vsyncadd (%p854_p8), [#allocation16], 4294967280 }
 0x78d PF: > { %p20_p9 = scmp.ge.s32.totalorder %s1131_s27, 4   ;;  %s1310_s23 = smov %s1048_s24 }
 0x78e   : > { %s1311_s24 = smov %s1052_s25  ;;  %s1312_s25 = smov %s1141_s30 }
 0x78f   : > { %s1313_s26 = smov %s1131_s27  ;;  %22 = sbr.rel (!%p20_p9) target bundleno = 7 (0x7), region = 93 }
 0x796   :  { %719 = vsyncpa [#allocation12], 1 }
 0x797   :  { %721 = vsyncpa [#allocation12 + $0x1], 1 }
 0x798   :  { %722 = vsyncpa [#allocation13], 1 }
 0x799   :  { %724 = vsyncpa [#allocation13 + $0x1], 1 }
 0x79a   :  { %725 = vsyncpa [#allocation16], 1 }

</bundles_post_ra>
